<compile_context>
chip_gen: v7x
topology: tpu7x:2x2x1
jax: 0.10.0
libtpu: 0.0.40
codegen_flags: <defaults>
</compile_context>

<pallas_src>
import jax
import jax.numpy as jnp
from jax import lax
from jax.experimental import pallas as pl
from jax.experimental.pallas import tpu as pltpu

HIDDEN = 256          # per-branch width (nn.Linear(*, 256))


def _round_up(x, m):
    return ((x + m - 1) // m) * m


def _choose_tiling(batch, block_b, min_split=512):
    """Pick (tile_rows, padded_batch, num_tiles) for the 1-D batch grid."""
    num_tiles = max(1, -(-batch // block_b))
    # v7x has two TensorCores sharing the "parallel" axis: prefer an even tile
    # count once each tile would still be >= min_split rows (the extra grid
    # step is negligible at that size on single-TC v5e/v6e).
    if num_tiles % 2 == 1 and batch >= 2 * min_split:
        num_tiles += 1
    tb = _round_up(-(-batch // num_tiles), 16)   # bf16 sublane packing: 16
    return tb, tb * num_tiles, num_tiles


def critic_kernel(s_ref, a_ref, ws_ref, bs_ref, wa_ref, ba_ref,
                  w1s_ref, w1a_ref, b1_ref, w2_ref, b2_ref, out_ref):
    # Branch layers (bf16 MXU, f32 accumulation).
    hs = jnp.dot(s_ref[...], ws_ref[...],
                 preferred_element_type=jnp.float32) + bs_ref[...]   # (TB, 256)
    hs = jnp.maximum(hs, 0.0)
    ha = jnp.dot(a_ref[...], wa_ref[...],
                 preferred_element_type=jnp.float32) + ba_ref[...]   # (TB, 256)
    ha = jnp.maximum(ha, 0.0)

    # fc1 over cat(hs, ha), expressed as two half-K matmuls (no concat needed).
    h2 = (jnp.dot(hs.astype(jnp.bfloat16), w1s_ref[...],
                  preferred_element_type=jnp.float32)
          + jnp.dot(ha.astype(jnp.bfloat16), w1a_ref[...],
                    preferred_element_type=jnp.float32)
          + b1_ref[...])                                             # (TB, 256)
    h2 = jnp.maximum(h2, 0.0)

    # fc2 (N=1) on the MXU: contract the feature dim of both operands so the
    # result is already the lane-dense (1, TB) row (no XLU transpose, no
    # 128-wide broadcast writeback).
    q = lax.dot_general(w2_ref[...], h2.astype(jnp.bfloat16),
                        (((1,), (1,)), ((), ())),
                        preferred_element_type=jnp.float32)          # (1, TB)
    out_ref[...] = (q + b2_ref[0, 0]).reshape(out_ref.shape)


def critic_forward(state, action, packed, *, block_b=1024):
    """Run the Critic forward pass. Returns (B, 1) float32 Q-values."""
    B, sd = state.shape
    ad = action.shape[1]

    tb, b_pad, num_tiles = _choose_tiling(B, block_b)

    # Cast activations to bf16 in the wrapper (halves input DMA bytes, removes
    # the per-tile VPU cast); pad only if the balanced tiling requires it.
    s = state.astype(jnp.bfloat16)
    a = action.astype(jnp.bfloat16)
    if b_pad != B:
        s = jnp.pad(s, ((0, b_pad - B), (0, 0)))
        a = jnp.pad(a, ((0, b_pad - B), (0, 0)))

    const = lambda i: (0, 0)
    out = pl.pallas_call(
        critic_kernel,
        out_shape=jax.ShapeDtypeStruct((num_tiles, 1, tb), jnp.float32),
        grid=(num_tiles,),
        in_specs=[
            pl.BlockSpec((tb, sd), lambda i: (i, 0)),           # state tile (bf16)
            pl.BlockSpec((tb, ad), lambda i: (i, 0)),           # action tile (bf16)
            pl.BlockSpec((sd, HIDDEN), const),                  # Ws       (bf16, resident)
            pl.BlockSpec((1, HIDDEN), const),                   # bs       (f32)
            pl.BlockSpec((ad, HIDDEN), const),                  # Wa       (bf16, resident)
            pl.BlockSpec((1, HIDDEN), const),                   # ba       (f32)
            pl.BlockSpec((HIDDEN, HIDDEN), const),              # W1 state half  (bf16)
            pl.BlockSpec((HIDDEN, HIDDEN), const),              # W1 action half (bf16)
            pl.BlockSpec((1, HIDDEN), const),                   # b1       (f32)
            pl.BlockSpec((1, HIDDEN), const),                   # w2 row   (bf16)
            pl.BlockSpec(memory_space=pltpu.MemorySpace.SMEM),  # b2 scalar in SMEM
        ],
        out_specs=pl.BlockSpec((1, 1, tb), lambda i: (i, 0, 0)),
        compiler_params=pltpu.CompilerParams(
            dimension_semantics=("parallel",)),                 # megacore on v7x
    )(s, a, packed["ws"], packed["bs"], packed["wa"], packed["ba"],
      packed["w1s"], packed["w1a"], packed["b1"], packed["w2_row"],
      packed["b2"])

    # (num_tiles, 1, tb) lane-packed Q rows -> (B, 1)
    return out.reshape(-1)[:B].reshape(B, 1)


def init_params(key, state_dim, action_dim):
    """PyTorch-default-like Linear init; weights stored transposed: (in, out)."""
    def linear(key, fan_in, fan_out):
        k_w, k_b = jax.random.split(key)
        bound = 1.0 / jnp.sqrt(fan_in)
        w = jax.random.uniform(k_w, (fan_in, fan_out), jnp.float32, -bound, bound)
        b = jax.random.uniform(k_b, (1, fan_out), jnp.float32, -bound, bound)
        return w, b

    k1, k2, k3, k4 = jax.random.split(key, 4)
    ws, bs = linear(k1, state_dim, HIDDEN)
    wa, ba = linear(k2, action_dim, HIDDEN)
    w1, b1 = linear(k3, 2 * HIDDEN, HIDDEN)
    w2, b2 = linear(k4, HIDDEN, 1)
    return {"ws": ws, "bs": bs, "wa": wa, "ba": ba,
            "w1": w1, "b1": b1, "w2": w2, "b2": b2}


def pack_params(params):
    """Pack raw (transposed-layout) params into the kernel's operands."""
    return {
        "ws": params["ws"].astype(jnp.bfloat16),             # (sd, 256)
        "bs": params["bs"],                                   # (1, 256) f32
        "wa": params["wa"].astype(jnp.bfloat16),              # (ad, 256)
        "ba": params["ba"],                                   # (1, 256) f32
        "w1s": params["w1"][:HIDDEN].astype(jnp.bfloat16),    # (256, 256) state half
        "w1a": params["w1"][HIDDEN:].astype(jnp.bfloat16),    # (256, 256) action half
        "b1": params["b1"],                                   # (1, 256) f32
        "w2_row": params["w2"].T.astype(jnp.bfloat16),        # (1, 256)
        "b2": params["b2"].reshape(1, 1),                     # (1, 1) f32
    }


def critic_reference(state, action, params):
    """Pure-JAX f32 reference with the exact PyTorch forward structure."""
    s = jnp.maximum(state @ params["ws"] + params["bs"], 0.0)
    a = jnp.maximum(action @ params["wa"] + params["ba"], 0.0)
    m = jnp.concatenate([s, a], axis=1)
    h = jnp.maximum(m @ params["w1"] + params["b1"], 0.0)
    return h @ params["w2"] + params["b2"]


if __name__ == "__main__":
    STATE_DIM, ACTION_DIM = 16, 8

    key = jax.random.PRNGKey(0)
    k_s, k_a, k_p = jax.random.split(key, 3)
    params = init_params(k_p, STATE_DIM, ACTION_DIM)
    packed = pack_params(params)

    # Small batch (single tile).
    B = 8
    state = jax.random.normal(k_s, (B, STATE_DIM), jnp.float32)
    action = jax.random.normal(k_a, (B, ACTION_DIM), jnp.float32)
    out = jax.block_until_ready(critic_forward(state, action, packed))
    ref = critic_reference(state, action, params)
    assert out.shape == (B, 1)
    err = jnp.max(jnp.abs(out - ref))
    # bf16 MXU inputs vs f32 reference -> looser tolerance.
    assert jnp.allclose(out, ref, atol=2e-2, rtol=2e-2), f"max abs err {err}"

    # Multi-tile path (grid > 1, padded last tile) with a tiny block_b.
    B2 = 40
    state2 = jax.random.normal(k_s, (B2, STATE_DIM), jnp.float32)
    action2 = jax.random.normal(k_a, (B2, ACTION_DIM), jnp.float32)
    out2 = jax.block_until_ready(critic_forward(state2, action2, packed, block_b=16))
    ref2 = critic_reference(state2, action2, params)
    assert out2.shape == (B2, 1)
    err2 = jnp.max(jnp.abs(out2 - ref2))
    assert jnp.allclose(out2, ref2, atol=2e-2, rtol=2e-2), f"max abs err {err2}"

    print("KERNEL_OK")
</pallas_src>

<mosaic_0001>
module attributes {stable_mosaic.version = 11 : i64} {
  func.func @critic_kernel(%arg0: i32, %arg1: memref<16x16xbf16, #tpu.memory_space<vmem>>, %arg2: memref<16x8xbf16, #tpu.memory_space<vmem>>, %arg3: memref<16x256xbf16, #tpu.memory_space<vmem>>, %arg4: memref<1x256xf32, #tpu.memory_space<vmem>>, %arg5: memref<8x256xbf16, #tpu.memory_space<vmem>>, %arg6: memref<1x256xf32, #tpu.memory_space<vmem>>, %arg7: memref<256x256xbf16, #tpu.memory_space<vmem>>, %arg8: memref<256x256xbf16, #tpu.memory_space<vmem>>, %arg9: memref<1x256xf32, #tpu.memory_space<vmem>>, %arg10: memref<1x256xbf16, #tpu.memory_space<vmem>>, %arg11: memref<1x1xf32, #tpu.memory_space<smem>>, %arg12: memref<1x1x16xf32, #tpu.memory_space<vmem>>) attributes {dimension_semantics = [#tpu.dimension_semantics<parallel>], iteration_bounds = array<i64: 1>, scalar_prefetch = 0 : i64, scratch_operands = 0 : i64, tpu.core_type = #tpu.core_type<tc>, window_params = [{transform_indices = @transform_0, window_bounds = array<i64: 16, 16>}, {transform_indices = @transform_1, window_bounds = array<i64: 16, 8>}, {pipeline_mode = #tpu.pipeline_mode<synchronous>, transform_indices = @transform_2, window_bounds = array<i64: 16, 256>}, {pipeline_mode = #tpu.pipeline_mode<synchronous>, transform_indices = @transform_3, window_bounds = array<i64: 1, 256>}, {pipeline_mode = #tpu.pipeline_mode<synchronous>, transform_indices = @transform_4, window_bounds = array<i64: 8, 256>}, {pipeline_mode = #tpu.pipeline_mode<synchronous>, transform_indices = @transform_5, window_bounds = array<i64: 1, 256>}, {pipeline_mode = #tpu.pipeline_mode<synchronous>, transform_indices = @transform_6, window_bounds = array<i64: 256, 256>}, {pipeline_mode = #tpu.pipeline_mode<synchronous>, transform_indices = @transform_7, window_bounds = array<i64: 256, 256>}, {pipeline_mode = #tpu.pipeline_mode<synchronous>, transform_indices = @transform_8, window_bounds = array<i64: 1, 256>}, {pipeline_mode = #tpu.pipeline_mode<synchronous>, transform_indices = @transform_9, window_bounds = array<i64: 1, 256>}, {transform_indices = @transform_10, window_bounds = array<i64: 1, 1>}, {transform_indices = @transform_11, window_bounds = array<i64: 1, 1, 16>}]} {
    %c0 = arith.constant 0 : index
    %c0_0 = arith.constant 0 : index
    %0 = vector.load %arg1[%c0, %c0_0] : memref<16x16xbf16, #tpu.memory_space<vmem>>, vector<16x16xbf16>
    %c0_1 = arith.constant 0 : index
    %c0_2 = arith.constant 0 : index
    %1 = vector.load %arg3[%c0_1, %c0_2] : memref<16x256xbf16, #tpu.memory_space<vmem>>, vector<16x256xbf16>
    %cst = arith.constant dense<0.000000e+00> : vector<16x256xf32>
    %2 = tpu.matmul %0, %1, %cst {dimension_numbers = #tpu.dot_dimension_numbers<[1], [0], [0], [1], [0, 0, 1, 1], [], []>} : vector<16x16xbf16>, vector<16x256xbf16>, vector<16x256xf32> -> vector<16x256xf32>
    %c0_3 = arith.constant 0 : index
    %c0_4 = arith.constant 0 : index
    %3 = vector.load %arg4[%c0_3, %c0_4] : memref<1x256xf32, #tpu.memory_space<vmem>>, vector<1x256xf32>
    %4 = vector.broadcast %3 : vector<1x256xf32> to vector<16x256xf32>
    %5 = arith.addf %2, %4 : vector<16x256xf32>
    %cst_5 = arith.constant 0.000000e+00 : f32
    %6 = vector.broadcast %cst_5 : f32 to vector<16x256xf32>
    %7 = arith.maximumf %5, %6 : vector<16x256xf32>
    %c0_6 = arith.constant 0 : index
    %c0_7 = arith.constant 0 : index
    %8 = vector.load %arg2[%c0_6, %c0_7] : memref<16x8xbf16, #tpu.memory_space<vmem>>, vector<16x8xbf16>
    %c0_8 = arith.constant 0 : index
    %c0_9 = arith.constant 0 : index
    %9 = vector.load %arg5[%c0_8, %c0_9] : memref<8x256xbf16, #tpu.memory_space<vmem>>, vector<8x256xbf16>
    %cst_10 = arith.constant dense<0.000000e+00> : vector<16x256xf32>
    %10 = tpu.matmul %8, %9, %cst_10 {dimension_numbers = #tpu.dot_dimension_numbers<[1], [0], [0], [1], [0, 0, 1, 1], [], []>} : vector<16x8xbf16>, vector<8x256xbf16>, vector<16x256xf32> -> vector<16x256xf32>
    %c0_11 = arith.constant 0 : index
    %c0_12 = arith.constant 0 : index
    %11 = vector.load %arg6[%c0_11, %c0_12] : memref<1x256xf32, #tpu.memory_space<vmem>>, vector<1x256xf32>
    %12 = vector.broadcast %11 : vector<1x256xf32> to vector<16x256xf32>
    %13 = arith.addf %10, %12 : vector<16x256xf32>
    %cst_13 = arith.constant 0.000000e+00 : f32
    %14 = vector.broadcast %cst_13 : f32 to vector<16x256xf32>
    %15 = arith.maximumf %13, %14 : vector<16x256xf32>
    %16 = arith.truncf %7 : vector<16x256xf32> to vector<16x256xbf16>
    %c0_14 = arith.constant 0 : index
    %c0_15 = arith.constant 0 : index
    %17 = vector.load %arg7[%c0_14, %c0_15] : memref<256x256xbf16, #tpu.memory_space<vmem>>, vector<256x256xbf16>
    %cst_16 = arith.constant dense<0.000000e+00> : vector<16x256xf32>
    %18 = tpu.matmul %16, %17, %cst_16 {dimension_numbers = #tpu.dot_dimension_numbers<[1], [0], [0], [1], [0, 0, 1, 1], [], []>} : vector<16x256xbf16>, vector<256x256xbf16>, vector<16x256xf32> -> vector<16x256xf32>
    %19 = arith.truncf %15 : vector<16x256xf32> to vector<16x256xbf16>
    %c0_17 = arith.constant 0 : index
    %c0_18 = arith.constant 0 : index
    %20 = vector.load %arg8[%c0_17, %c0_18] : memref<256x256xbf16, #tpu.memory_space<vmem>>, vector<256x256xbf16>
    %cst_19 = arith.constant dense<0.000000e+00> : vector<16x256xf32>
    %21 = tpu.matmul %19, %20, %cst_19 {dimension_numbers = #tpu.dot_dimension_numbers<[1], [0], [0], [1], [0, 0, 1, 1], [], []>} : vector<16x256xbf16>, vector<256x256xbf16>, vector<16x256xf32> -> vector<16x256xf32>
    %22 = arith.addf %18, %21 : vector<16x256xf32>
    %c0_20 = arith.constant 0 : index
    %c0_21 = arith.constant 0 : index
    %23 = vector.load %arg9[%c0_20, %c0_21] : memref<1x256xf32, #tpu.memory_space<vmem>>, vector<1x256xf32>
    %24 = vector.broadcast %23 : vector<1x256xf32> to vector<16x256xf32>
    %25 = arith.addf %22, %24 : vector<16x256xf32>
    %cst_22 = arith.constant 0.000000e+00 : f32
    %26 = vector.broadcast %cst_22 : f32 to vector<16x256xf32>
    %27 = arith.maximumf %25, %26 : vector<16x256xf32>
    %c0_23 = arith.constant 0 : index
    %c0_24 = arith.constant 0 : index
    %28 = vector.load %arg10[%c0_23, %c0_24] : memref<1x256xbf16, #tpu.memory_space<vmem>>, vector<1x256xbf16>
    %29 = arith.truncf %27 : vector<16x256xf32> to vector<16x256xbf16>
    %cst_25 = arith.constant dense<0.000000e+00> : vector<1x16xf32>
    %30 = tpu.matmul %28, %29, %cst_25 {dimension_numbers = #tpu.dot_dimension_numbers<[1], [1], [0], [0], [0, 0, 1, 0], [], []>} : vector<1x256xbf16>, vector<16x256xbf16>, vector<1x16xf32> -> vector<1x16xf32>
    %c0_26 = arith.constant 0 : index
    %c0_27 = arith.constant 0 : index
    %31 = memref.load %arg11[%c0_26, %c0_27] : memref<1x1xf32, #tpu.memory_space<smem>>
    %32 = vector.broadcast %31 : f32 to vector<1x16xf32>
    %33 = arith.addf %30, %32 : vector<1x16xf32>
    %34 = vector.shape_cast %33 : vector<1x16xf32> to vector<1x1x16xf32>
    %c0_28 = arith.constant 0 : index
    %c0_29 = arith.constant 0 : index
    %c0_30 = arith.constant 0 : index
    %35 = vector.load %arg12[%c0_28, %c0_29, %c0_30] : memref<1x1x16xf32, #tpu.memory_space<vmem>>, vector<1x1x16xf32>
    tpu.vector_store %arg12[%c0_28, %c0_29, %c0_30], %34 {strides = array<i32>} : memref<1x1x16xf32, #tpu.memory_space<vmem>>, vector<1x1x16xf32>,
    return
  }
  func.func @transform_0(%arg0: i32) -> (i32, i32) {
    %c0_i32 = arith.constant 0 : i32
    %c0_i32_0 = arith.constant 0 : i32
    return %arg0, %c0_i32 : i32, i32
  }
  func.func @transform_1(%arg0: i32) -> (i32, i32) {
    %c0_i32 = arith.constant 0 : i32
    %c0_i32_0 = arith.constant 0 : i32
    return %arg0, %c0_i32 : i32, i32
  }
  func.func @transform_2(%arg0: i32) -> (i32, i32) {
    %c0_i32 = arith.constant 0 : i32
    %c0_i32_0 = arith.constant 0 : i32
    %c0_i32_1 = arith.constant 0 : i32
    return %c0_i32, %c0_i32_0 : i32, i32
  }
  func.func @transform_3(%arg0: i32) -> (i32, i32) {
    %c0_i32 = arith.constant 0 : i32
    %c0_i32_0 = arith.constant 0 : i32
    %c0_i32_1 = arith.constant 0 : i32
    return %c0_i32, %c0_i32_0 : i32, i32
  }
  func.func @transform_4(%arg0: i32) -> (i32, i32) {
    %c0_i32 = arith.constant 0 : i32
    %c0_i32_0 = arith.constant 0 : i32
    %c0_i32_1 = arith.constant 0 : i32
    return %c0_i32, %c0_i32_0 : i32, i32
  }
  func.func @transform_5(%arg0: i32) -> (i32, i32) {
    %c0_i32 = arith.constant 0 : i32
    %c0_i32_0 = arith.constant 0 : i32
    %c0_i32_1 = arith.constant 0 : i32
    return %c0_i32, %c0_i32_0 : i32, i32
  }
  func.func @transform_6(%arg0: i32) -> (i32, i32) {
    %c0_i32 = arith.constant 0 : i32
    %c0_i32_0 = arith.constant 0 : i32
    %c0_i32_1 = arith.constant 0 : i32
    return %c0_i32, %c0_i32_0 : i32, i32
  }
  func.func @transform_7(%arg0: i32) -> (i32, i32) {
    %c0_i32 = arith.constant 0 : i32
    %c0_i32_0 = arith.constant 0 : i32
    %c0_i32_1 = arith.constant 0 : i32
    return %c0_i32, %c0_i32_0 : i32, i32
  }
  func.func @transform_8(%arg0: i32) -> (i32, i32) {
    %c0_i32 = arith.constant 0 : i32
    %c0_i32_0 = arith.constant 0 : i32
    %c0_i32_1 = arith.constant 0 : i32
    return %c0_i32, %c0_i32_0 : i32, i32
  }
  func.func @transform_9(%arg0: i32) -> (i32, i32) {
    %c0_i32 = arith.constant 0 : i32
    %c0_i32_0 = arith.constant 0 : i32
    %c0_i32_1 = arith.constant 0 : i32
    return %c0_i32, %c0_i32_0 : i32, i32
  }
  func.func @transform_10(%arg0: i32) -> (i32, i32) {
    %c0_i32 = arith.constant 0 : i32
    %c0_i32_0 = arith.constant 0 : i32
    %c0_i32_1 = arith.constant 0 : i32
    return %c0_i32, %c0_i32_0 : i32, i32
  }
  func.func @transform_11(%arg0: i32) -> (i32, i32, i32) {
    %c0_i32 = arith.constant 0 : i32
    %c0_i32_0 = arith.constant 0 : i32
    %c0_i32_1 = arith.constant 0 : i32
    return %arg0, %c0_i32, %c0_i32_0 : i32, i32, i32
  }
}

</mosaic_0001>

<bundles_post_ra>
// kernel: tpu_custom_call.1
= control target key start
LH: loop header
LB: loop body
LE: loop exit
PB: predicated region body
PF: predicated region fallthrough
CT: control target
= control target key end

     0   :  { %17 = vsyncpa [#allocation4], 0  ;;  %s1265_s0 = inlined_call_operand.hbm [shape: bf16[16,16], index: 0, kind: input, shape index: {}]   ;;  %s1266_s1 = inlined_call_operand.vmem [shape: bf16[16,8], index: 1, kind: input, shape index: {}]   ;;  %s1267_s2 = inlined_call_operand.vmem [shape: bf16[16,256], index: 2, kind: input, shape index: {}]   ;;  %s1268_s3 = inlined_call_operand.vmem [shape: f32[1,256], index: 3, kind: input, shape index: {}]   ;;  %s1269_s4 = inlined_call_operand.vmem [shape: bf16[8,256], index: 4, kind: input, shape index: {}]   ;;  %s1270_s5 = inlined_call_operand.vmem [shape: f32[1,256], index: 5, kind: input, shape index: {}]   ;;  %s1271_s6 = inlined_call_operand.hbm [shape: bf16[256,256], index: 6, kind: input, shape index: {}]   ;;  %s1272_s7 = inlined_call_operand.hbm [shape: bf16[256,256], index: 7, kind: input, shape index: {}]   ;;  %s1273_s8 = inlined_call_operand.vmem [shape: f32[1,256], index: 8, kind: input, shape index: {}]   ;;  %s1274_s9 = inlined_call_operand.vmem [shape: bf16[1,256], index: 9, kind: input, shape index: {}]   ;;  %s1275_s10 = inlined_call_operand.<no memory space> [shape: f32[1,1], index: 10, kind: input, shape index: {}]   ;;  %s1276_s11 = inlined_call_operand.hbm [shape: f32[1,1,16], index: 11, kind: output, shape index: {}]  }
   0x1   :  { %18 = vsyncpa [#allocation7], 0 }
   0x2   :  { %19 = vsyncpa [#allocation5], 0  ;;  %s1114_s17 = smov [#allocation6]   ;;  %s1020_s21 = scalar_lea.hbm %s1271_s6, 4096 }
   0x3   :  { %s47_s18 = sshll.u32 %s1114_s17, 4  ;;  %p1021_p0 = scmp.ne.s32.totalorder %s1271_s6, %s1020_s21  ;;  %s48_s18 = int_to_ptr.vmem [resolvable:$true] %s47_s18 }
   0x4   :  { %p1024_p1 = scmp.lt.u32.totalorder %s1020_s21, %s1271_s6 }
   0x6   :  { %p1026_p2 = pnand %p1024_p1, %p1021_p0 }
   0x8   :  { %1029 = shalt.err (!%p1026_p2)
}
   0x9   :  { %s1030_s26 = scalar_lea.vmem %s48_s18, 4096  ;;  %p1035_p4 = scmp.lt.s32.totalorder %s48_s18, %s48_s18 }
   0xa   :  { %p1031_p3 = scmp.ne.s32.totalorder %s48_s18, %s1030_s26  ;;  %p1036_p5 = scmp.lt.s32.totalorder %s1030_s26, %s1030_s26 }
   0xc   :  { %p1037_p6 = por %p1036_p5, %p1035_p4 }
   0xe   :  { %p1038_p7 = pnand %p1037_p6, %p1031_p3 }
  0x10   :  { %1041 = shalt.err (!%p1038_p7)
}
  0x11   :  { %s1115_s27 = smov 128   ;;  %s1116_s28 = smov 8  }
  0x12   :  { %53 = dma.hbm_to_vmem [thread:$0]  %s1271_s6, 4096, %s48_s18, [#allocation7], %s1115_s27, %s1115_s27, %s1116_s28  }
  0x13   :  { %s1117_s12 = smov [#allocation3]   ;;  %s1042_s16 = scalar_lea.hbm %s1265_s0, 128 }
  0x14   :  { %s25_s13 = sshll.u32 %s1117_s12, 4  ;;  %p1043_p8 = scmp.ne.s32.totalorder %s1265_s0, %s1042_s16  ;;  %s26_s13 = int_to_ptr.vmem [resolvable:$true] %s25_s13 }
  0x15   :  { %p1046_p9 = scmp.lt.u32.totalorder %s1042_s16, %s1265_s0 }
  0x17   :  { %p1048_p10 = pnand %p1046_p9, %p1043_p8 }
  0x19   :  { %1051 = shalt.err (!%p1048_p10)
}
  0x1a   :  { %s1052_s22 = scalar_lea.vmem %s26_s13, 128  ;;  %p1057_p12 = scmp.lt.s32.totalorder %s26_s13, %s26_s13 }
  0x1b   :  { %p1053_p11 = scmp.ne.s32.totalorder %s26_s13, %s1052_s22  ;;  %p1058_p13 = scmp.lt.s32.totalorder %s1052_s22, %s1052_s22 }
  0x1d   :  { %p1059_p0 = por %p1058_p13, %p1057_p12 }
  0x1f   :  { %p1060_p1 = pnand %p1059_p0, %p1053_p11 }
  0x21   :  { %1063 = shalt.err (!%p1060_p1)
}
  0x22   :  { %s1118_s6 = smov 64   ;;  %s1119_s18 = smov 4  }
  0x23   :  { %31 = dma.hbm_to_vmem [thread:$0]  %s1265_s0, 128, %s26_s13, [#allocation4], %s1118_s6, %s1118_s6, %s1119_s18  }
  0x24   :  { %s1120_s25 = smov [#allocation8]   ;;  %s1064_s12 = scalar_lea.hbm %s1272_s7, 4096 }
  0x25   :  { %s59_s26 = sshll.u32 %s1120_s25, 4  ;;  %p1065_p2 = scmp.ne.s32.totalorder %s1272_s7, %s1064_s12  ;;  %s60_s26 = int_to_ptr.vmem [resolvable:$true] %s59_s26 }
  0x26   :  { %p1068_p3 = scmp.lt.u32.totalorder %s1064_s12, %s1272_s7 }
  0x28   :  { %p1070_p4 = pnand %p1068_p3, %p1065_p2 }
  0x2a   :  { %1073 = shalt.err (!%p1070_p4)
}
  0x2b   :  { %s1074_s19 = scalar_lea.vmem %s60_s26, 4096  ;;  %p1079_p6 = scmp.lt.s32.totalorder %s60_s26, %s60_s26 }
  0x2c   :  { %p1075_p5 = scmp.ne.s32.totalorder %s60_s26, %s1074_s19  ;;  %p1080_p7 = scmp.lt.s32.totalorder %s1074_s19, %s1074_s19 }
  0x2e   :  { %p1081_p8 = por %p1080_p7, %p1079_p6 }
  0x30   :  { %p1082_p9 = pnand %p1081_p8, %p1075_p5 }
  0x32   :  { %1085 = shalt.err (!%p1082_p9)
}
  0x33   :  { %65 = dma.hbm_to_vmem [thread:$0]  %s1272_s7, 4096, %s60_s26, [#allocation7], %s1115_s27, %s1115_s27, %s1116_s28  }
  0x34   :  { %1108 = dma.done.wait [#allocation4], 128  }
  0x35   :  { %1109 = vsyncadd [#allocation4], 4294967168 }
  0x36   :  { %1110 = dma.done.wait [#allocation7], 8192  }
  0x37   :  { %1111 = vsyncadd [#allocation7], 4294959104  ;;  %v1121_v0 = vmov 0   ;;  %v917_v1 = vld [vmem:[%s1267_s2 + $0x4] ss:$8 sps:$4 sm:$0xff]   ;;  %vm193_vm0 = vcmask 1043456  }
  0x38   :  { %149 = vmatprep.mubr.bf16.mxu0 %v1121_v0  ;;  %232 = vmatprep.mubr.bf16.mxu1 %v1121_v0  ;;  %v166_v2 = vld [vmem:[%s1269_s4] sm:$0xff]  ;;  %vm113_vm1 = vcmask 130048   ;;  %v924_v9 = vld [vmem:[#allocation8] ss:$8 sps:$4 sm:$0xff]   ;;  %v926_v10 = vld [vmem:[#allocation8 + $0x4] ss:$8 sps:$4 sm:$0xff]  }
  0x39   :  { %v920_v3 = vld [vmem:[%s1267_s2] ss:$8 sps:$4 sm:$0xff]   ;;  %117 = vmatprep.subr.bf16.mxu0 %v917_v1  ;;  %v835_v4 = vcombine.high %v166_v2, %v166_v2  ;;  %v834_v5 = vcombine.low %v166_v2, %v166_v2  ;;  %vm189_vm2 = vcmask 64512   ;;  %v929_v12 = vld [vmem:[#allocation6 + $0x4] ss:$8 sps:$4 sm:$0xff]   ;;  %s1123_s26 = smov [#allocation9]  }
  0x3a   :  { %v922_v6 = vld [vmem:[#allocation3] sm:$0xff]   ;;  %118 = vmatpush1.bf16.msra.mxu0 %v920_v3  ;;  %v927_v11 = vld [vmem:[#allocation6] ss:$8 sps:$4 sm:$0xff]   ;;  %v938_v17 = vld [vmem:[#allocation8 + $0x24] ss:$8 sps:$4 sm:$0xff]   ;;  %s819_s29 = sshll.u32 %s1123_s26, 4  ;;  %s820_s29 = int_to_ptr.vmem [resolvable:$true] %s819_s29 }
  0x3b   :  { %v923_v7 = vld [vmem:[%s1266_s1] sm:$0xff]   ;;  %836 = vmatprep.subr.msk.bf16.mxu1 %vm193_vm0, %v835_v4  ;;  %v195_v8 = vsel %vm193_vm0, %v834_v5, 0  ;;  %678 = vmatprep.subr.bf16.mxu0 %v929_v12  ;;  %v941_v18 = vld [vmem:[#allocation6 + $0x24] ss:$8 sps:$4 sm:$0xff]   ;;  %v936_v19 = vld [vmem:[#allocation8 + $0x20] ss:$8 sps:$4 sm:$0xff]   ;;  %p1091_p11 = scmp.lt.s32.totalorder %s820_s29, %s820_s29 }
  0x3c   :  { %201 = vmatpush1.bf16.msra.mxu1 %v195_v8  ;;  %v932_v13 = vld [vmem:[#allocation8 + $0x14] ss:$8 sps:$4 sm:$0xff]   ;;  %v930_v14 = vld [vmem:[#allocation8 + $0x10] ss:$8 sps:$4 sm:$0xff]   ;;  %v939_v20 = vld [vmem:[#allocation6 + $0x20] ss:$8 sps:$4 sm:$0xff]  }
  0x3d   :  { %832 = vmatmul.mubr.msk.bf16.vlgmr.msra.gmra.mrb[0].mxu0 %vm113_vm1, %v922_v6  ;;  %475 = vmatprep.subr.bf16.mxu1 %v926_v10  ;;  %v935_v15 = vld [vmem:[#allocation6 + $0x14] ss:$8 sps:$4 sm:$0xff]   ;;  %v933_v16 = vld [vmem:[#allocation6 + $0x10] ss:$8 sps:$4 sm:$0xff]   ;;  %v950_v25 = vld [vmem:[#allocation8 + $0x44] ss:$8 sps:$4 sm:$0xff]  }
  0x3e   :  { %679 = vmatpush1.bf16.msra.mxu0 %v927_v11  ;;  %v944_v21 = vld [vmem:[#allocation8 + $0x34] ss:$8 sps:$4 sm:$0xff]   ;;  %v942_v23 = vld [vmem:[#allocation8 + $0x30] ss:$8 sps:$4 sm:$0xff]   ;;  %v953_v26 = vld [vmem:[#allocation6 + $0x44] ss:$8 sps:$4 sm:$0xff]  }
  0x3f   :  { %837 = vmatmul.mubr.msk.bf16.vlgmr.msra.gmra.mrb[0].mxu1 %vm189_vm2, %v923_v7  ;;  %680 = vmatprep.subr.bf16.mxu0 %v935_v15  ;;  %v947_v22 = vld [vmem:[#allocation6 + $0x34] ss:$8 sps:$4 sm:$0xff]   ;;  %v945_v24 = vld [vmem:[#allocation6 + $0x30] ss:$8 sps:$4 sm:$0xff]   ;;  %v948_v27 = vld [vmem:[#allocation8 + $0x40] ss:$8 sps:$4 sm:$0xff]  }
  0x40   :  { %476 = vmatpush1.bf16.msra.mxu1 %v924_v9  ;;  %v951_v28 = vld [vmem:[#allocation6 + $0x40] ss:$8 sps:$4 sm:$0xff]   ;;  %v956_v29 = vld [vmem:[#allocation8 + $0x54] ss:$8 sps:$4 sm:$0xff]   ;;  %v954_v31 = vld [vmem:[#allocation8 + $0x50] ss:$8 sps:$4 sm:$0xff]   ;;  %v88_v9 = vlaneseq }
  0x41   :  { %477 = vmatprep.subr.bf16.mxu1 %v932_v13  ;;  %v959_v30 = vld [vmem:[#allocation6 + $0x54] ss:$8 sps:$4 sm:$0xff]   ;;  %v957_v32 = vld [vmem:[#allocation6 + $0x50] ss:$8 sps:$4 sm:$0xff]   ;;  %v962_v33 = vld [vmem:[#allocation8 + $0x64] ss:$8 sps:$4 sm:$0xff]  }
  0x42   :  { %681 = vmatpush1.bf16.msra.mxu0 %v933_v16  ;;  %v965_v34 = vld [vmem:[#allocation6 + $0x64] ss:$8 sps:$4 sm:$0xff]   ;;  %v960_v35 = vld [vmem:[#allocation8 + $0x60] ss:$8 sps:$4 sm:$0xff]   ;;  %v968_v37 = vld [vmem:[#allocation8 + $0x74] ss:$8 sps:$4 sm:$0xff]  }
  0x43   :  { %682 = vmatprep.subr.bf16.mxu0 %v941_v18  ;;  %v963_v36 = vld [vmem:[#allocation6 + $0x60] ss:$8 sps:$4 sm:$0xff]   ;;  %v971_v38 = vld [vmem:[#allocation6 + $0x74] ss:$8 sps:$4 sm:$0xff]   ;;  %v966_v39 = vld [vmem:[#allocation8 + $0x70] ss:$8 sps:$4 sm:$0xff]  }
  0x44   :  { %478 = vmatpush1.bf16.msra.mxu1 %v930_v14  ;;  %v969_v40 = vld [vmem:[#allocation6 + $0x70] ss:$8 sps:$4 sm:$0xff]   ;;  %v974_v41 = vld [vmem:[#allocation8 + $0x84] ss:$8 sps:$4 sm:$0xff]   ;;  %v972_v43 = vld [vmem:[#allocation8 + $0x80] ss:$8 sps:$4 sm:$0xff]  }
  0x45   :  { %479 = vmatprep.subr.bf16.mxu1 %v938_v17  ;;  %v977_v42 = vld [vmem:[#allocation6 + $0x84] ss:$8 sps:$4 sm:$0xff]   ;;  %v975_v44 = vld [vmem:[#allocation6 + $0x80] ss:$8 sps:$4 sm:$0xff]   ;;  %v980_v45 = vld [vmem:[#allocation8 + $0x94] ss:$8 sps:$4 sm:$0xff]  }
  0x46   :  { %683 = vmatpush1.bf16.msra.mxu0 %v939_v20  ;;  %v983_v46 = vld [vmem:[#allocation6 + $0x94] ss:$8 sps:$4 sm:$0xff]   ;;  %v978_v47 = vld [vmem:[#allocation8 + $0x90] ss:$8 sps:$4 sm:$0xff]   ;;  %v986_v49 = vld [vmem:[#allocation8 + $0xa4] ss:$8 sps:$4 sm:$0xff]  }
  0x47   :  { %684 = vmatprep.subr.bf16.mxu0 %v947_v22  ;;  %v981_v48 = vld [vmem:[#allocation6 + $0x90] ss:$8 sps:$4 sm:$0xff]   ;;  %v989_v50 = vld [vmem:[#allocation6 + $0xa4] ss:$8 sps:$4 sm:$0xff]   ;;  %v984_v51 = vld [vmem:[#allocation8 + $0xa0] ss:$8 sps:$4 sm:$0xff]  }
  0x48   :  { %480 = vmatpush1.bf16.msra.mxu1 %v936_v19  ;;  %v987_v52 = vld [vmem:[#allocation6 + $0xa0] ss:$8 sps:$4 sm:$0xff]   ;;  %v992_v53 = vld [vmem:[#allocation8 + $0xb4] ss:$8 sps:$4 sm:$0xff]   ;;  %v990_v55 = vld [vmem:[#allocation8 + $0xb0] ss:$8 sps:$4 sm:$0xff]  }
  0x49   :  { %481 = vmatprep.subr.bf16.mxu1 %v944_v21  ;;  %v995_v54 = vld [vmem:[#allocation6 + $0xb4] ss:$8 sps:$4 sm:$0xff]   ;;  %v993_v56 = vld [vmem:[#allocation6 + $0xb0] ss:$8 sps:$4 sm:$0xff]   ;;  %v998_v57 = vld [vmem:[#allocation8 + $0xc4] ss:$8 sps:$4 sm:$0xff]  }
  0x4a   :  { %685 = vmatpush1.bf16.msra.mxu0 %v945_v24  ;;  %v1001_v58 = vld [vmem:[#allocation6 + $0xc4] ss:$8 sps:$4 sm:$0xff]   ;;  %v996_v59 = vld [vmem:[#allocation8 + $0xc0] ss:$8 sps:$4 sm:$0xff]   ;;  %v1004_v61 = vld [vmem:[#allocation8 + $0xd4] ss:$8 sps:$4 sm:$0xff]  }
  0x4b   :  { %686 = vmatprep.subr.bf16.mxu0 %v953_v26  ;;  %v999_v60 = vld [vmem:[#allocation6 + $0xc0] ss:$8 sps:$4 sm:$0xff]   ;;  %v1007_v62 = vld [vmem:[#allocation6 + $0xd4] ss:$8 sps:$4 sm:$0xff]   ;;  %v1002_v63 = vld [vmem:[#allocation8 + $0xd0] ss:$8 sps:$4 sm:$0xff]  }
  0x4c   :  { %482 = vmatpush1.bf16.msra.mxu1 %v942_v23  ;;  %v1005_v0 = vld [vmem:[#allocation6 + $0xd0] ss:$8 sps:$4 sm:$0xff]   ;;  %v1013_v1 = vld [vmem:[#allocation6 + $0xe4] ss:$8 sps:$4 sm:$0xff]   ;;  %v1011_v3 = vld [vmem:[#allocation6 + $0xe0] ss:$8 sps:$4 sm:$0xff]  }
  0x4d   :  { %483 = vmatprep.subr.bf16.mxu1 %v950_v25  ;;  %v1010_v2 = vld [vmem:[#allocation8 + $0xe4] ss:$8 sps:$4 sm:$0xff]   ;;  %v1008_v4 = vld [vmem:[#allocation8 + $0xe0] ss:$8 sps:$4 sm:$0xff]   ;;  %v1019_v5 = vld [vmem:[#allocation6 + $0xf4] ss:$8 sps:$4 sm:$0xff]  }
  0x4e   :  { %687 = vmatpush1.bf16.msra.mxu0 %v951_v28  ;;  %v1016_v6 = vld [vmem:[#allocation8 + $0xf4] ss:$8 sps:$4 sm:$0xff]   ;;  %v1017_v7 = vld [vmem:[#allocation6 + $0xf0] ss:$8 sps:$4 sm:$0xff]   ;;  %v89_v10 = vshrl.u32 %v88_v9, 7  ;;  %vm811_vm3 = vcmask 122880  }
  0x4f   :  { %688 = vmatprep.subr.bf16.mxu0 %v959_v30  ;;  %v1014_v8 = vld [vmem:[#allocation8 + $0xf0] ss:$8 sps:$4 sm:$0xff]   ;;  %s1086_s30 = scalar_lea.vmem %s820_s29, 16  ;;  %s1090_s12 = scalar_lea.vmem %s820_s29, 32 }
  0x50   :  { %484 = vmatpush1.bf16.msra.mxu1 %v948_v27  ;;  %v90_v11 = vsub.s32 0, %v89_v10  ;;  %v86_v12 = vld [vmem:[%s1268_s3] sm:$0x3]  ;;  %v94_v13 = vsub.s32 1, %v89_v10  ;;  %p1087_p10 = scmp.ne.s32.totalorder %s820_s29, %s1086_s30  ;;  %p1092_p12 = scmp.lt.s32.totalorder %s1090_s12, %s1086_s30 }
  0x51   :  { %485 = vmatprep.subr.bf16.mxu1 %v956_v29  ;;  %v167_v14 = vld [vmem:[%s1270_s5] sm:$0x3] }
  0x52   :  { %689 = vmatpush1.bf16.msra.mxu0 %v957_v32  ;;  %v91_v15 = vrot.slane %v86_v12, %v90_v11  ;;  %v95_v16 = vrot.slane %v86_v12, %v94_v13  ;;  %v172_v17 = vrot.slane %v167_v14, %v90_v11  ;;  %v176_v19 = vrot.slane %v167_v14, %v94_v13  ;;  %p1093_p13 = por %p1092_p12, %p1091_p11 }
  0x53   :  { %690 = vmatprep.subr.bf16.mxu0 %v965_v34 }
  0x54   :  { %486 = vmatpush1.bf16.msra.mxu1 %v954_v31  ;;  %p1094_p0 = pnand %p1093_p13, %p1087_p10 }
  0x55   :  { %487 = vmatprep.subr.bf16.mxu1 %v962_v33 }
  0x56   :  { %691 = vmatpush1.bf16.msra.mxu0 %v963_v36 }
  0x57   :  { %692 = vmatprep.subr.bf16.mxu0 %v971_v38 }
  0x58   :  { %488 = vmatpush1.bf16.msra.mxu1 %v960_v35 }
  0x59   :  { %489 = vmatprep.subr.bf16.mxu1 %v968_v37 }
  0x5a   :  { %693 = vmatpush1.bf16.msra.mxu0 %v969_v40 }
  0x5b   :  { %694 = vmatprep.subr.bf16.mxu0 %v977_v42 }
  0x5c   :  { %490 = vmatpush1.bf16.msra.mxu1 %v966_v39 }
  0x5d   :  { %491 = vmatprep.subr.bf16.mxu1 %v974_v41 }
  0x5e   :  { %695 = vmatpush1.bf16.msra.mxu0 %v975_v44 }
  0x5f   :  { %696 = vmatprep.subr.bf16.mxu0 %v983_v46 }
  0x60   :  { %492 = vmatpush1.bf16.msra.mxu1 %v972_v43 }
  0x61   :  { %493 = vmatprep.subr.bf16.mxu1 %v980_v45 }
  0x62   :  { %697 = vmatpush1.bf16.msra.mxu0 %v981_v48 }
  0x63   :  { %698 = vmatprep.subr.bf16.mxu0 %v989_v50 }
  0x64   :  { %494 = vmatpush1.bf16.msra.mxu1 %v978_v47  ;;  %v1122_v47 = vmov 1966171168  }
  0x65   :  { %495 = vmatprep.subr.bf16.mxu1 %v986_v49  ;;  %v756_v48 = vunpack.c.l.s4 %v1122_v47  ;;  %v902_v49 = vld.sshfl [vmem:[%s1274_s9] sm:$0x11 pattern:$0x75316420] }
  0x66   :  { %699 = vmatpush1.bf16.msra.mxu0 %v987_v52 }
  0x67   :  { %700 = vmatprep.subr.bf16.mxu0 %v995_v54  ;;  %v757_v50 = vunpack.c.0.s8 %v756_v48 }
  0x68   :  { %496 = vmatpush1.bf16.msra.mxu1 %v984_v51  ;;  %v754_v51 = vcombine.high %v902_v49, %v902_v49 }
  0x69   :  { %497 = vmatprep.subr.bf16.mxu1 %v992_v53  ;;  %v760_v52 = vsub.s32 %v757_v50, %v89_v10 }
  0x6a   :  { %701 = vmatpush1.bf16.msra.mxu0 %v993_v56 }
  0x6b   :  { %702 = vmatprep.subr.bf16.mxu0 %v1001_v58  ;;  %v768_v53 = vrot.slane %v754_v51, %v760_v52  ;;  %v761_v54 = vrot.slane %v902_v49, %v760_v52 }
  0x6c   :  { %498 = vmatpush1.bf16.msra.mxu1 %v990_v55  ;;  %v721_v55 = vld [vmem:[%s1273_s8] sm:$0x3] }
  0x6d   :  { %499 = vmatprep.subr.bf16.mxu1 %v998_v57  ;;  %v726_v57 = vrot.slane %v721_v55, %v90_v11 }
  0x6e   :  { %703 = vmatpush1.bf16.msra.mxu0 %v999_v60  ;;  %v730_v60 = vrot.slane %v721_v55, %v94_v13  ;;  %v745_v13 = vstv %s1275_s10 }
  0x6f   :  { %704 = vmatprep.subr.bf16.mxu0 %v1007_v62 }
  0x70   :  { %500 = vmatpush1.bf16.msra.mxu1 %v996_v59 }
  0x71   :  { %501 = vmatprep.subr.bf16.mxu1 %v1004_v61 }
  0x72   :  { %705 = vmatpush1.bf16.msra.mxu0 %v1005_v0 }
  0x73   :  { %706 = vmatprep.subr.bf16.mxu0 %v1013_v1 }
  0x74   :  { %502 = vmatpush1.bf16.msra.mxu1 %v1002_v63 }
  0x75   :  { %503 = vmatprep.subr.bf16.mxu1 %v1010_v2 }
  0x76   :  { %707 = vmatpush1.bf16.msra.mxu0 %v1011_v3 }
  0x77   :  { %708 = vmatprep.subr.bf16.mxu0 %v1019_v5 }
  0x78   :  { %504 = vmatpush1.bf16.msra.mxu1 %v1008_v4 }
  0x79   :  { %505 = vmatprep.subr.bf16.mxu1 %v1016_v6 }
  0x7a   :  { %709 = vmatpush1.bf16.msra.mxu0 %v1017_v7 }
  0x7c   :  { %506 = vmatpush1.bf16.msra.mxu1 %v1014_v8 }
 0x110   :  { %v151_v18 = vpop.f32.mrb[0].mxu0 }
 0x111   :  { %v152_v20 = vadd.f32 %v151_v18, %v91_v15  ;;  %v153_v21 = vpop.f32.mrb[1].mxu0 }
 0x112   :  { %v234_v22 = vpop.f32.mrb[0].mxu1  ;;  %v154_v23 = vadd.f32 %v153_v21, %v95_v16  ;;  %v155_v24 = vpop.f32.mrb[2].mxu0 }
 0x113   :  { %v160_v25 = vmax.f32 %v152_v20, 0.0  ;;  %v235_v26 = vadd.f32 %v234_v22, %v172_v17  ;;  %v236_v27 = vpop.f32.mrb[1].mxu1  ;;  %v156_v28 = vadd.f32 %v155_v24, %v91_v15  ;;  %v157_v29 = vpop.f32.mrb[3].mxu0 }
 0x114   :  { %v237_v30 = vadd.f32 %v236_v27, %v176_v19  ;;  %v238_v31 = vpop.f32.mrb[2].mxu1  ;;  %v158_v32 = vadd.f32 %v157_v29, %v95_v16  ;;  %v161_v36 = vmax.f32 %v154_v23, 0.0 }
 0x115   :  { %v162_v33 = vmax.f32 %v156_v28, 0.0  ;;  %v239_v34 = vadd.f32 %v238_v31, %v172_v17  ;;  %v240_v35 = vpop.f32.mrb[3].mxu1  ;;  %v243_v39 = vmax.f32 %v235_v26, 0.0 }
 0x116   :  { %v163_v37 = vmax.f32 %v158_v32, 0.0  ;;  %v241_v38 = vadd.f32 %v240_v35, %v176_v19  ;;  %v244_v42 = vmax.f32 %v237_v30, 0.0 }
 0x117   :  { %v247_v40 = vpack.c.bf16 %v162_v33, %v160_v25  ;;  %v245_v41 = vmax.f32 %v239_v34, 0.0 }
 0x118   :  { %v248_v43 = vpack.c.bf16 %v163_v37, %v161_v36  ;;  %v246_v44 = vmax.f32 %v241_v38, 0.0 }
 0x119   :  { %v281_v45 = vpack.c.bf16 %v245_v41, %v243_v39 }
 0x11a   :  { %v282_v46 = vpack.c.bf16 %v246_v44, %v244_v42  ;;  %710 = vmatprep.mubr.bf16.mxu0 %v248_v43 }
 0x11b   :  { %711 = vmatmul.mubr.bf16.vlgmr.msra.gmra.mrb[4].mxu0 %v247_v40 }
 0x11c   :  { %507 = vmatprep.mubr.bf16.mxu1 %v282_v46 }
 0x11d   :  { %508 = vmatmul.mubr.bf16.vlgmr.msra.gmra.mrb[4].mxu1 %v281_v45 }
 0x11e   :  { %803 = vmatprep.mubr.bf16.mxu1 %v768_v53 }
 0x1ee   :  { %v712_v56 = vpop.f32.mrb[4].mxu0 }
 0x1ef   :  { %v714_v58 = vpop.f32.mrb[5].mxu0 }
 0x1f0   :  { %v509_v59 = vpop.f32.mrb[4].mxu1  ;;  %v716_v61 = vpop.f32.mrb[6].mxu0 }
 0x1f1   :  { %v713_v62 = vadd.f32 %v712_v56, %v509_v59  ;;  %v511_v63 = vpop.f32.mrb[5].mxu1  ;;  %v718_v0 = vpop.f32.mrb[7].mxu0 }
 0x1f2   :  { %v715_v1 = vadd.f32 %v714_v58, %v511_v63  ;;  %v513_v2 = vpop.f32.mrb[6].mxu1 }
 0x1f3   :  { %v733_v3 = vadd.f32 %v726_v57, %v713_v62  ;;  %v717_v4 = vadd.f32 %v716_v61, %v513_v2  ;;  %v515_v5 = vpop.f32.mrb[7].mxu1 }
 0x1f4   :  { %v734_v6 = vadd.f32 %v730_v60, %v715_v1  ;;  %v719_v7 = vadd.f32 %v718_v0, %v515_v5 }
 0x1f5   :  { %v735_v8 = vadd.f32 %v726_v57, %v717_v4  ;;  %v737_v10 = vmax.f32 %v733_v3, 0.0 }
 0x1f6   :  { %v736_v9 = vadd.f32 %v730_v60, %v719_v7  ;;  %v738_v14 = vmax.f32 %v734_v6, 0.0 }
 0x1f7   :  { %v739_v12 = vmax.f32 %v735_v8, 0.0 }
 0x1f8   :  { %v740_v11 = vmax.f32 %v736_v9, 0.0 }
 0x1f9   :  { %v742_v15 = vpack.c.bf16 %v739_v12, %v737_v10 }
 0x1fa   :  { %v743_v16 = vpack.c.bf16 %v740_v11, %v738_v14 }
 0x1fc   :  { %771 = vmatprep.subr.bf16.mxu1 %v743_v16 }
 0x1fd   :  { %772 = vmatpush1.bf16.xpose.msra.mxu1 %v742_v15 }
 0x204   :  { %804 = vmatmul.mubr.bf16.vlgmr.msra.gmra.mrb[8].mxu1 %v761_v54 }
 0x2d7   :  { %v805_v17 = vpop.f32.mrb[8].mxu1 }
 0x2d8   :  { %v806_v18 = vadd.f32 %v805_v17, %v745_v13  ;;  %v807_v19 = vpop.f32.mrb[9].mxu1 }
 0x2d9   :  { %v808_v20 = vpop.f32.mrb[10].mxu1 }
 0x2da   :  { %v809_v21 = vpop.f32.mrb[11].mxu1  ;;  %812 = vst.msk [vmem:[#allocation9] sm:$0x1] %vm811_vm3, %v806_v18 }
 0x2db   :  { %1097 = shalt.err (!%p1094_p0)
}
 0x2dc   :  { %s1098_s15 = scalar_lea.hbm %s1276_s11, 16 }
 0x2dd   :  { %p1099_p1 = scmp.ne.s32.totalorder %s1276_s11, %s1098_s15  ;;  %p1102_p2 = scmp.lt.u32.totalorder %s1098_s15, %s1276_s11 }
 0x2df   :  { %p1104_p3 = pnand %p1102_p2, %p1099_p1 }
 0x2e1   :  { %1107 = shalt.err (!%p1104_p3)
}
 0x2e2   :  { %822 = dma.vmem_to_hbm [thread:$0]  %s820_s29, 16, %s1276_s11, [#allocation5]  }
 0x2e3   :  { %1112 = dma.done.wait [#allocation5], 16  }
 0x2e4   :  { %1113 = vsyncadd [#allocation5], 4294967280 }
 0x2e5   :  { %826 = vsyncpa [#allocation4], 1 }
 0x2e6   :  { %827 = vsyncpa [#allocation7], 1 }
 0x2e7   :  { %828 = vsyncpa [#allocation5], 1 }

</bundles_post_ra>
